<compile_context>
chip_gen: v7x
topology: tpu7x:2x2x1
jax: 0.10.0
libtpu: 0.0.40
codegen_flags: <defaults>
</compile_context>

<pallas_src>
import jax
import jax.numpy as jnp
from jax.experimental import pallas as pl
from jax.experimental.pallas import tpu as pltpu


def _uncert_weighting_kernel(x_ref, ml_ref, total_ref):
    # x_ref: (2, N) f32 in VMEM; row 0 = losses, row 1 = log_vars.
    losses = x_ref[0:1, :]     # (1, N)
    log_vars = x_ref[1:2, :]   # (1, N)

    # coeffs = 1 / (2 * exp(log_vars)^2) == 0.5 * exp(-2 * log_vars)
    coeffs = 0.5 * jnp.exp(-2.0 * log_vars)

    multi_task_losses = losses * coeffs + log_vars   # (1, N)
    ml_ref[...] = multi_task_losses

    # Scalar total -> 1-D SMEM ref (4 bytes, no padded 2-D SMEM tile).
    total_ref[0] = jnp.sum(multi_task_losses)


@jax.jit
def uncert_weighting(losses, log_vars):
    """losses: (n_losses,), log_vars: (n_losses,).

    Returns (total_loss scalar, multi_task_losses (n_losses,)), matching the
    PyTorch UncertWeighting.forward.
    """
    n = losses.shape[0]
    # Single stacked input -> one HBM->VMEM DMA; fuses with upstream under jit.
    x = jnp.stack(
        [losses.astype(jnp.float32), log_vars.astype(jnp.float32)], axis=0
    )  # (2, n)

    ml_2d, total_1d = pl.pallas_call(
        _uncert_weighting_kernel,
        out_shape=(
            jax.ShapeDtypeStruct((1, n), jnp.float32),
            jax.ShapeDtypeStruct((1,), jnp.float32),
        ),
        in_specs=[
            pl.BlockSpec(memory_space=pltpu.MemorySpace.VMEM),
        ],
        out_specs=(
            pl.BlockSpec(memory_space=pltpu.MemorySpace.VMEM),
            pl.BlockSpec(memory_space=pltpu.MemorySpace.SMEM),
        ),
        cost_estimate=pl.CostEstimate(
            flops=4 * n, transcendentals=n, bytes_accessed=12 * n
        ),
    )(x)

    total_loss = total_1d[0]
    multi_task_losses = ml_2d.reshape(n)
    return total_loss, multi_task_losses


if __name__ == "__main__":
    n_losses = 4

    # Parameter init matches nn.Parameter(torch.zeros(n_losses)).
    log_vars = jnp.zeros((n_losses,), dtype=jnp.float32)

    # Deterministic example input losses.
    key = jax.random.PRNGKey(0)
    losses = jax.random.uniform(key, (n_losses,), dtype=jnp.float32) * 2.0

    total_loss, multi_task_losses = uncert_weighting(losses, log_vars)
    jax.block_until_ready((total_loss, multi_task_losses))

    # Pure-JAX reference (mirrors the PyTorch forward exactly).
    stds_ref = jnp.exp(log_vars)
    coeffs_ref = 1.0 / (2.0 * stds_ref**2)
    ml_ref = losses * coeffs_ref + log_vars
    total_ref = jnp.sum(ml_ref)

    assert jnp.allclose(multi_task_losses, ml_ref, rtol=1e-5, atol=1e-6)
    assert jnp.allclose(total_loss, total_ref, rtol=1e-5, atol=1e-6)

    print("KERNEL_OK")
</pallas_src>

<mosaic_0001>
module attributes {stable_mosaic.version = 11 : i64} {
  func.func @_uncert_weighting_kernel(%arg0: memref<2x4xf32, #tpu.memory_space<vmem>>, %arg1: memref<1x4xf32, #tpu.memory_space<vmem>>, %arg2: memref<1xf32, #tpu.memory_space<smem>>) attributes {dimension_semantics = [], scalar_prefetch = 0 : i64, scratch_operands = 0 : i64, tpu.core_type = #tpu.core_type<tc>} {
    %c0 = arith.constant 0 : index
    %c0_0 = arith.constant 0 : index
    %0 = vector.load %arg0[%c0, %c0_0] : memref<2x4xf32, #tpu.memory_space<vmem>>, vector<1x4xf32>
    %c1 = arith.constant 1 : index
    %c0_1 = arith.constant 0 : index
    %1 = vector.load %arg0[%c1, %c0_1] : memref<2x4xf32, #tpu.memory_space<vmem>>, vector<1x4xf32>
    %cst = arith.constant -2.000000e+00 : f32
    %2 = vector.broadcast %cst : f32 to vector<1x4xf32>
    %3 = arith.mulf %2, %1 : vector<1x4xf32>
    %4 = math.exp %3 : vector<1x4xf32>
    %cst_2 = arith.constant 5.000000e-01 : f32
    %5 = vector.broadcast %cst_2 : f32 to vector<1x4xf32>
    %6 = arith.mulf %5, %4 : vector<1x4xf32>
    %7 = arith.mulf %0, %6 : vector<1x4xf32>
    %8 = arith.addf %7, %1 : vector<1x4xf32>
    %c0_3 = arith.constant 0 : index
    %c0_4 = arith.constant 0 : index
    %9 = vector.load %arg1[%c0_3, %c0_4] : memref<1x4xf32, #tpu.memory_space<vmem>>, vector<1x4xf32>
    tpu.vector_store %arg1[%c0_3, %c0_4], %8 {strides = array<i32>} : memref<1x4xf32, #tpu.memory_space<vmem>>, vector<1x4xf32>,
    %10 = vector.shape_cast %8 : vector<1x4xf32> to vector<1x1x4xf32>
    %cst_5 = arith.constant dense<0.000000e+00> : vector<1xf32>
    %11 = vector.multi_reduction <add>, %10, %cst_5 [1, 2] : vector<1x1x4xf32> to vector<1xf32>
    %12 = vector.shape_cast %11 : vector<1xf32> to vector<1x1x1xf32>
    %13 = vector.extract %12[0, 0, 0] : f32 from vector<1x1x1xf32>
    %c0_6 = arith.constant 0 : index
    %14 = memref.load %arg2[%c0_6] : memref<1xf32, #tpu.memory_space<smem>>
    memref.store %13, %arg2[%c0_6] : memref<1xf32, #tpu.memory_space<smem>>
    return
  }
}

</mosaic_0001>

<bundles_post_ra>
// kernel: uncert_weighting.1
= control target key start
LH: loop header
LB: loop body
LE: loop exit
PB: predicated region body
PF: predicated region fallthrough
CT: control target
= control target key end

     0   :  { %8 = vsyncpa [#allocation3], 0  ;;  %s150_s0 = inlined_call_operand.vmem [shape: f32[2,4], index: 0, kind: input, shape index: {}]   ;;  %s151_s1 = inlined_call_operand.hbm [shape: f32[1,4], index: 1, kind: output, shape index: {0}]   ;;  %s152_s2 = inlined_call_operand.hbm [shape: f32[1], index: 2, kind: output, shape index: {1}]  }
   0x1   :  { %v13_v0 = vld [vmem:[%s150_s0 + $0x1] sm:$0x1] }
   0x2   :  { %v14_v1 = vmul.f32 -2.0, %v13_v0 }
   0x3   :  { %9 = vsyncpa [#allocation4], 0  ;;  %v12_v4 = vld [vmem:[%s150_s0] sm:$0x1]  ;;  %vm20_vm0 = vcmask 24576   ;;  %s103_s13 = smov [#allocation2]  }
   0x4   :  { %v15_v2 = vmul.f32 1.442695, %v14_v1  ;;  %s40_s14 = sshll.u32 %s103_s13, 4  ;;  %s41_s14 = int_to_ptr.vmem [resolvable:$true] %s40_s14 }
   0x5   :  { %s67_s15 = scalar_lea.vmem %s41_s14, 16  ;;  %s71_s16 = scalar_lea.vmem %s41_s14, 32 }
   0x6   :  { %65 = vpow2.f32 %v15_v2  ;;  %p68_p0 = scmp.ne.s32.totalorder %s41_s14, %s67_s15  ;;  %p72_p1 = scmp.lt.s32.totalorder %s41_s14, %s41_s14 }
   0x7   :  { %p73_p2 = scmp.lt.s32.totalorder %s71_s16, %s67_s15 }
   0x9   :  { %p74_p3 = por %p73_p2, %p72_p1 }
   0xb   :  { %p75_p4 = pnand %p74_p3, %p68_p0 }
  0x10   :  { %v66_v3 = vpop.eup %65 }
  0x11   :  { %v17_v5 = vmul.f32 0.5, %v66_v3 }
  0x13   :  { %v18_v6 = vmul.f32 %v17_v5, %v12_v4 }
  0x15   :  { %v19_v7 = vadd.f32 %v18_v6, %v13_v0 }
  0x17   :  { %v22_v8 = vsel %vm20_vm0, %v19_v7, 0.0  ;;  %21 = vst.msk [vmem:[#allocation2] sm:$0x1] %vm20_vm0, %v19_v7 }
  0x18   :  { %23 = vadd.xlane.f32.xlu0 %v22_v8 }
  0x19   :  { %78 = shalt.err (!%p75_p4)
}
  0x1a   :  { %s79_s18 = scalar_lea.hbm %s151_s1, 16 }
  0x1b   :  { %p80_p5 = scmp.ne.s32.totalorder %s151_s1, %s79_s18  ;;  %p83_p6 = scmp.lt.u32.totalorder %s79_s18, %s151_s1 }
  0x1d   :  { %p85_p7 = pnand %p83_p6, %p80_p5 }
  0x1f   :  { %88 = shalt.err (!%p85_p7)
}
  0x20   :  { %43 = dma.vmem_to_hbm [thread:$0]  %s41_s14, 16, %s151_s1, [#allocation3]  }
  0x21   :  { %s89_s28 = scalar_lea.hbm %s152_s2, 16 }
  0x22   :  { %p90_p8 = scmp.ne.s32.totalorder %s152_s2, %s89_s28  ;;  %p93_p9 = scmp.lt.u32.totalorder %s89_s28, %s152_s2 }
  0x24   :  { %p95_p10 = pnand %p93_p9, %p90_p8 }
  0xa5   :  { %v24_v9 = vpop.xlane.xlu0 %23 }
  0xa6   :  { %v25_v10 = vrot.slane %v24_v9, 4 }
  0xa8   :  { %v26_v11 = vadd.f32 %v25_v10, %v24_v9 }
  0xaa   :  { %v27_v12 = vrot.slane %v26_v11, 2 }
  0xac   :  { %v28_v13 = vadd.f32 %v27_v12, %v26_v11 }
  0xae   :  { %v29_v14 = vrot.slane %v28_v13, 1 }
  0xb0   :  { %v30_v15 = vadd.f32 %v29_v14, %v28_v13 }
  0xb2   :  { %61 = vpush %v30_v15 }
  0xe3   :  { %s62_s25 = spop %61 }
  0xe4   :  { %33 = sst [smem:[#allocation5]] %s62_s25 }
  0xe5   :  { %98 = shalt.err (!%p95_p10)
}
  0xe6   :  { %s104_s4 = smov [#allocation5]  }
  0xe7   :  { %51 = dma.smem_to_hbm %s104_s4, 16, %s152_s2, [#allocation4]  }
  0xe8   :  { %99 = dma.done.wait [#allocation3], 16  }
  0xe9   :  { %100 = vsyncadd [#allocation3], 4294967280 }
  0xea   :  { %101 = dma.done.wait [#allocation4], 16  }
  0xeb   :  { %102 = vsyncadd [#allocation4], 4294967280 }
  0xec   :  { %58 = sfence }
  0xed   :  { %59 = vsyncpa [#allocation3], 1 }
  0xee   :  { %60 = vsyncpa [#allocation4], 1 }

</bundles_post_ra>
